<compile_context>
chip_gen: v6e
topology: v6e:2x2x1
jax: 0.10.0
libtpu: 0.0.40
codegen_flags: <defaults>
</compile_context>

<pallas_src>
import jax
import jax.numpy as jnp
from jax.experimental import pallas as pl
from jax.experimental.pallas import tpu as pltpu

INPUT_DIM = 4            # 3 HR states + time channel == Conv1d signal length
OUT_DIM = INPUT_DIM - 1  # forward returns [:, :3]
MID_CHANNELS = 16
KERNEL_SIZE = 3          # padding = 1, stride = 1


# ---------------------------------------------------------------------------
# Pallas kernel: out[i, :] = bt[i] + sum_j Wy[j, i] * y[j, :]
# ---------------------------------------------------------------------------
def affine_kernel(w_ref, b_ref, y_ref, o_ref):
    """One lane block of the folded (conv1∘conv2) affine map.

    w_ref : SMEM (9,)   Wy[j, i] stored row-major at index 3*j + i
    b_ref : SMEM (3,)   time-folded effective bias
    y_ref : VMEM (3, TB)  rows = HR state dims, lanes = batch
    o_ref : VMEM (3, TB)
    """
    y = y_ref[...]                       # single full-block load, (3, TB) f32
    y0 = y[0:1, :]
    y1 = y[1:2, :]
    y2 = y[2:3, :]

    rows = []
    for i in range(OUT_DIM):             # 9 scalar-weight x full-lane FMAs total
        rows.append(
            b_ref[i]
            + w_ref[0 * OUT_DIM + i] * y0
            + w_ref[1 * OUT_DIM + i] * y1
            + w_ref[2 * OUT_DIM + i] * y2
        )
    o_ref[...] = jnp.concatenate(rows, axis=0)   # one lane-dense (3, TB) store


# ---------------------------------------------------------------------------
# Parameter folding: conv1∘conv2 (both linear) -> 4x4 affine map, keep 3 rows.
# ---------------------------------------------------------------------------
def _composed_conv_1d(x4, params):
    """conv2(conv1(x)) for a single single-channel length-4 signal. Returns (4,)."""
    w1t, b1, w2t, b2 = params
    xpad = jnp.pad(x4, (1, 1))                                              # (6,)
    win_x = jnp.stack([xpad[l:l + KERNEL_SIZE] for l in range(INPUT_DIM)], 0)  # (4,3)
    h = win_x @ w1t + b1                                                    # (4,16)
    hpad = jnp.pad(h, ((1, 1), (0, 0)))                                     # (6,16)
    win_h = jnp.stack([hpad[l:l + KERNEL_SIZE] for l in range(INPUT_DIM)], 0)  # (4,3,16)
    return jnp.einsum('ljc,jc->l', win_h, w2t) + b2[0, 0]                   # (4,)


def fold_params(params):
    """Returns (W_full (4 in, 3 out), b_full (3,)) s.t. out = x @ W_full + b_full."""
    zero = jnp.zeros((INPUT_DIM,), jnp.float32)
    b_all = _composed_conv_1d(zero, params)                                  # (4,)
    cols = jax.vmap(lambda e: _composed_conv_1d(e, params) - b_all)(
        jnp.eye(INPUT_DIM, dtype=jnp.float32))                               # (4 in, 4 out)
    return cols[:, :OUT_DIM], b_all[:OUT_DIM]


def _round_up(n, m):
    return ((n + m - 1) // m) * m


# ---------------------------------------------------------------------------
# Wrappers
# ---------------------------------------------------------------------------
def twoconv_forward_lanes(t, yT, folded, *, block_lanes=2048):
    """Lane-major entry: yT is (3, B), returns (3, B)."""
    W_full, b_full = folded                     # (4, 3), (3,)
    t = jnp.asarray(t, jnp.float32)
    bt = b_full + t * W_full[0, :]              # fold the time channel into the bias
    w_flat = W_full[1:, :].reshape(-1)          # (9,)  Wy[j, i] row-major

    B = yT.shape[1]
    yT = yT.astype(jnp.float32)
    Bp = _round_up(max(B, 1), 128)
    if Bp != B:
        yT = jnp.pad(yT, ((0, 0), (0, Bp - B)))

    tb = min(int(block_lanes), Bp)
    # v7x: keep >= 2 "parallel" blocks when the padded batch allows it.
    if Bp // tb == 1 and Bp >= 256 and Bp % 256 == 0:
        tb = Bp // 2
    if Bp % tb != 0:
        Bp2 = _round_up(Bp, tb)
        yT = jnp.pad(yT, ((0, 0), (0, Bp2 - Bp)))
        Bp = Bp2
    grid = (Bp // tb,)

    out = pl.pallas_call(
        affine_kernel,
        out_shape=jax.ShapeDtypeStruct((OUT_DIM, Bp), jnp.float32),
        grid_spec=pltpu.PrefetchScalarGridSpec(
            num_scalar_prefetch=0,
            grid=grid,
            in_specs=[
                pl.BlockSpec(memory_space=pltpu.MemorySpace.SMEM),   # w_flat (9,)
                pl.BlockSpec(memory_space=pltpu.MemorySpace.SMEM),   # bt (3,)
                pl.BlockSpec((OUT_DIM, tb), lambda i: (0, i)),       # yT block
            ],
            out_specs=pl.BlockSpec((OUT_DIM, tb), lambda i: (0, i)),
        ),
        compiler_params=pltpu.CompilerParams(
            dimension_semantics=("parallel",),   # batch blocks split across v7x's 2 TCs
        ),
        cost_estimate=pl.CostEstimate(
            flops=18 * Bp,                        # 9 FMAs per batch column
            transcendentals=0,
            bytes_accessed=24 * Bp + 48,          # 3x f32 in + 3x f32 out per column
        ),
    )(w_flat, bt, yT)
    return out[:, :B]


def twoconv_forward(t, y, params, *, block_lanes=2048):
    """Reproduces TwoConvLayer.forward(t, y): y (B, 3) -> (B, 3)."""
    folded = fold_params(params)   # tiny pure-jnp prep; cache per-params if desired
    outT = twoconv_forward_lanes(t, y.T, folded, block_lanes=block_lanes)
    return outT.T


# ---------------------------------------------------------------------------
# Reference + init (same layout conventions as before)
# ---------------------------------------------------------------------------
def init_params(key):
    """Mimics torch.nn.Conv1d default init (U[-1/sqrt(fan_in), +1/sqrt(fan_in)]).

    conv1.weight (16,1,3) stored as (3,16): w1t[j, c] = W1[c, 0, j]
    conv2.weight (1,16,3) stored as (3,16): w2t[j, c] = W2[0, c, j]
    """
    k1w, k1b, k2w, k2b = jax.random.split(key, 4)
    bound1 = 1.0 / (1 * KERNEL_SIZE) ** 0.5
    bound2 = 1.0 / (MID_CHANNELS * KERNEL_SIZE) ** 0.5
    w1t = jax.random.uniform(k1w, (KERNEL_SIZE, MID_CHANNELS), jnp.float32, -bound1, bound1)
    b1 = jax.random.uniform(k1b, (1, MID_CHANNELS), jnp.float32, -bound1, bound1)
    w2t = jax.random.uniform(k2w, (KERNEL_SIZE, MID_CHANNELS), jnp.float32, -bound2, bound2)
    b2 = jax.random.uniform(k2b, (1, 1), jnp.float32, -bound2, bound2)
    return (w1t, b1, w2t, b2)


def reference_forward(t, y, params):
    """Pure-JAX reference using lax.conv_general_dilated (torch-style cross-correlation)."""
    w1t, b1, w2t, b2 = params
    B = y.shape[0]
    x = jnp.concatenate(
        [jnp.full((B, 1), t, dtype=jnp.float32), y.astype(jnp.float32)], axis=1
    )[:, None, :]                                            # (B, 1, 4)  NCW
    w1_oiw = jnp.transpose(w1t, (1, 0))[:, None, :]          # (16, 1, 3)
    h = jax.lax.conv_general_dilated(
        x, w1_oiw, window_strides=(1,), padding=((1, 1),),
        dimension_numbers=("NCW", "OIW", "NCW"))
    h = h + b1.reshape(1, MID_CHANNELS, 1)
    w2_oiw = jnp.transpose(w2t, (1, 0))[None, :, :]          # (1, 16, 3)
    o = jax.lax.conv_general_dilated(
        h, w2_oiw, window_strides=(1,), padding=((1, 1),),
        dimension_numbers=("NCW", "OIW", "NCW"))
    o = o + b2.reshape(1, 1, 1)
    return o.reshape(B, -1)[:, :OUT_DIM]


if __name__ == "__main__":
    key = jax.random.PRNGKey(0)
    kp, ky = jax.random.split(key)
    params = init_params(kp)

    # Small batch of RHS evaluations; B=200 exercises lane padding (->256) and
    # the 2-block split path.
    B = 200
    y = jax.random.normal(ky, (B, OUT_DIM), dtype=jnp.float32)   # (batch, 3) HR states
    t = jnp.float32(0.25)

    out = jax.block_until_ready(twoconv_forward(t, y, params))
    ref = reference_forward(t, y, params)

    assert out.shape == (B, OUT_DIM), out.shape
    err = float(jnp.max(jnp.abs(out - ref)))
    assert jnp.allclose(out, ref, atol=1e-4, rtol=1e-4), err
    print("KERNEL_OK")
</pallas_src>

<mosaic_0001>
module attributes {stable_mosaic.version = 11 : i64} {
  func.func @affine_kernel(%arg0: i32, %arg1: memref<9xf32, #tpu.memory_space<smem>>, %arg2: memref<3xf32, #tpu.memory_space<smem>>, %arg3: memref<3x128xf32, #tpu.memory_space<vmem>>, %arg4: memref<3x128xf32, #tpu.memory_space<vmem>>) attributes {dimension_semantics = [#tpu.dimension_semantics<parallel>], iteration_bounds = array<i64: 2>, scalar_prefetch = 0 : i64, scratch_operands = 0 : i64, tpu.core_type = #tpu.core_type<tc>, window_params = [{transform_indices = @transform_0, window_bounds = array<i64: 9>}, {transform_indices = @transform_1, window_bounds = array<i64: 3>}, {transform_indices = @transform_2, window_bounds = array<i64: 3, 128>}, {transform_indices = @transform_3, window_bounds = array<i64: 3, 128>}]} {
    %c0 = arith.constant 0 : index
    %c0_0 = arith.constant 0 : index
    %0 = vector.load %arg3[%c0, %c0_0] : memref<3x128xf32, #tpu.memory_space<vmem>>, vector<3x128xf32>
    %1 = vector.extract_strided_slice %0 {offsets = [0, 0], sizes = [1, 128], strides = [1, 1]} : vector<3x128xf32> to vector<1x128xf32>
    %2 = vector.extract_strided_slice %0 {offsets = [1, 0], sizes = [1, 128], strides = [1, 1]} : vector<3x128xf32> to vector<1x128xf32>
    %3 = vector.extract_strided_slice %0 {offsets = [2, 0], sizes = [1, 128], strides = [1, 1]} : vector<3x128xf32> to vector<1x128xf32>
    %c0_1 = arith.constant 0 : index
    %4 = memref.load %arg2[%c0_1] : memref<3xf32, #tpu.memory_space<smem>>
    %c0_2 = arith.constant 0 : index
    %5 = memref.load %arg1[%c0_2] : memref<9xf32, #tpu.memory_space<smem>>
    %6 = vector.broadcast %5 : f32 to vector<1x128xf32>
    %7 = arith.mulf %6, %1 : vector<1x128xf32>
    %8 = vector.broadcast %4 : f32 to vector<1x128xf32>
    %9 = arith.addf %8, %7 : vector<1x128xf32>
    %c3 = arith.constant 3 : index
    %10 = memref.load %arg1[%c3] : memref<9xf32, #tpu.memory_space<smem>>
    %11 = vector.broadcast %10 : f32 to vector<1x128xf32>
    %12 = arith.mulf %11, %2 : vector<1x128xf32>
    %13 = arith.addf %9, %12 : vector<1x128xf32>
    %c6 = arith.constant 6 : index
    %14 = memref.load %arg1[%c6] : memref<9xf32, #tpu.memory_space<smem>>
    %15 = vector.broadcast %14 : f32 to vector<1x128xf32>
    %16 = arith.mulf %15, %3 : vector<1x128xf32>
    %17 = arith.addf %13, %16 : vector<1x128xf32>
    %c1 = arith.constant 1 : index
    %18 = memref.load %arg2[%c1] : memref<3xf32, #tpu.memory_space<smem>>
    %c1_3 = arith.constant 1 : index
    %19 = memref.load %arg1[%c1_3] : memref<9xf32, #tpu.memory_space<smem>>
    %20 = vector.broadcast %19 : f32 to vector<1x128xf32>
    %21 = arith.mulf %20, %1 : vector<1x128xf32>
    %22 = vector.broadcast %18 : f32 to vector<1x128xf32>
    %23 = arith.addf %22, %21 : vector<1x128xf32>
    %c4 = arith.constant 4 : index
    %24 = memref.load %arg1[%c4] : memref<9xf32, #tpu.memory_space<smem>>
    %25 = vector.broadcast %24 : f32 to vector<1x128xf32>
    %26 = arith.mulf %25, %2 : vector<1x128xf32>
    %27 = arith.addf %23, %26 : vector<1x128xf32>
    %c7 = arith.constant 7 : index
    %28 = memref.load %arg1[%c7] : memref<9xf32, #tpu.memory_space<smem>>
    %29 = vector.broadcast %28 : f32 to vector<1x128xf32>
    %30 = arith.mulf %29, %3 : vector<1x128xf32>
    %31 = arith.addf %27, %30 : vector<1x128xf32>
    %c2 = arith.constant 2 : index
    %32 = memref.load %arg2[%c2] : memref<3xf32, #tpu.memory_space<smem>>
    %c2_4 = arith.constant 2 : index
    %33 = memref.load %arg1[%c2_4] : memref<9xf32, #tpu.memory_space<smem>>
    %34 = vector.broadcast %33 : f32 to vector<1x128xf32>
    %35 = arith.mulf %34, %1 : vector<1x128xf32>
    %36 = vector.broadcast %32 : f32 to vector<1x128xf32>
    %37 = arith.addf %36, %35 : vector<1x128xf32>
    %c5 = arith.constant 5 : index
    %38 = memref.load %arg1[%c5] : memref<9xf32, #tpu.memory_space<smem>>
    %39 = vector.broadcast %38 : f32 to vector<1x128xf32>
    %40 = arith.mulf %39, %2 : vector<1x128xf32>
    %41 = arith.addf %37, %40 : vector<1x128xf32>
    %c8 = arith.constant 8 : index
    %42 = memref.load %arg1[%c8] : memref<9xf32, #tpu.memory_space<smem>>
    %43 = vector.broadcast %42 : f32 to vector<1x128xf32>
    %44 = arith.mulf %43, %3 : vector<1x128xf32>
    %45 = arith.addf %41, %44 : vector<1x128xf32>
    %46 = tpu.concatenate %17, %31, %45 in 0 : vector<1x128xf32>, vector<1x128xf32>, vector<1x128xf32> -> vector<3x128xf32>
    %c0_5 = arith.constant 0 : index
    %c0_6 = arith.constant 0 : index
    %47 = vector.load %arg4[%c0_5, %c0_6] : memref<3x128xf32, #tpu.memory_space<vmem>>, vector<3x128xf32>
    tpu.vector_store %arg4[%c0_5, %c0_6], %46 {strides = array<i32>} : memref<3x128xf32, #tpu.memory_space<vmem>>, vector<3x128xf32>,
    return
  }
  func.func @transform_0(%arg0: i32) -> i32 {
    %c0_i32 = arith.constant 0 : i32
    %c0_i32_0 = arith.constant 0 : i32
    return %c0_i32 : i32
  }
  func.func @transform_1(%arg0: i32) -> i32 {
    %c0_i32 = arith.constant 0 : i32
    %c0_i32_0 = arith.constant 0 : i32
    return %c0_i32 : i32
  }
  func.func @transform_2(%arg0: i32) -> (i32, i32) {
    %c0_i32 = arith.constant 0 : i32
    %c0_i32_0 = arith.constant 0 : i32
    return %c0_i32, %arg0 : i32, i32
  }
  func.func @transform_3(%arg0: i32) -> (i32, i32) {
    %c0_i32 = arith.constant 0 : i32
    %c0_i32_0 = arith.constant 0 : i32
    return %c0_i32, %arg0 : i32, i32
  }
}

</mosaic_0001>

<bundles_post_ra>
// kernel: tpu_custom_call.1
= control target key start
LH: loop header
LB: loop body
LE: loop exit
PB: predicated region body
PF: predicated region fallthrough
CT: control target
= control target key end

     0   :  { %8 = vsyncpa [#allocation5], 0  ;;  %s815_s0 = inlined_call_operand.hbm [shape: f32[9], index: 0, kind: input, shape index: {}]   ;;  %s816_s1 = inlined_call_operand.vmem [shape: f32[3], index: 1, kind: input, shape index: {}]   ;;  %s817_s2 = inlined_call_operand.hbm [shape: f32[3,256], index: 2, kind: input, shape index: {}]   ;;  %s818_s3 = inlined_call_operand.hbm [shape: f32[3,256], index: 3, kind: output, shape index: {}]  }
   0x1   :  { %9 = vsyncpa [#allocation6], 0 }
   0x2   :  { %10 = vsyncpa [#allocation3], 0 }
   0x3   :  { %12 = vsyncpa [#allocation3 + $0x1], 0 }
   0x4   :  { %13 = vsyncpa [#allocation4], 0 }
   0x5   :  { %15 = vsyncpa [#allocation4 + $0x1], 0  ;;  %s636_s12 = smov 0   ;;  %s638_s13 = smov 0  }
   0x6   :  { %s640_s14 = smov 0   ;;  %s642_s15 = smov 0  }
   0x7 LB: > { %s657_s16 = sadd.s32 4294967295, %s610_s15   ;;  %s391_s17 = sadd.s32 4294967294, %s610_s15   ;;  %s610_s15 = sphi %s642_s15, %s842_s15   ;;  %s606_s14 = sphi %s640_s14, %s841_s14   ;;  %s602_s13 = sphi %s638_s13, %s840_s13   ;;  %s598_s12 = sphi %s636_s12, %s839_s12  }
   0x8   : > { %p83_p0 = scmp.ne.s32.totalorder %s602_s13, %s598_s12  ;;  %p819_p1 = scmp.eq.s32.totalorder %s657_s16, 0 }
   0x9   : > { %p107_p2 = scmp.eq.s32.totalorder %s657_s16, 1  ;;  %p113_p3 = scmp.eq.s32.totalorder %s391_s17, 1 }
   0xa   : > { %p666_p4 = por %p819_p1, %p83_p0  ;;  %p392_p5 = scmp.ge.s32.totalorder %s610_s15, 1 }
   0xb   : > { %p671_p6 = por %p113_p3, %p83_p0  ;;  %p120_p7 = scmp.lt.s32.totalorder %s610_s15, 3 }
   0xc   : > { %s823_s18 = scalar_select %p666_p4, 1, 0 }
   0xd   : > { %s824_s19 = scalar_select %p671_p6, 1, 0 }
   0xe   : > { %p676_p8 = pnand %p392_p5, %p120_p7  ;;  %s142_s23 = sshll.u32 %s816_s1, 4  ;;  %s143_s23 = int_to_ptr.vmem [resolvable:$true] %s142_s23 }
   0xf   : > { %s687_s24 = sadd.s32 1, %s610_s15   ;;  %s70_s27 = sadd.s32 1, %s606_s14 }
  0x10   : > { %s825_s20 = scalar_select %p676_p8, 1, 0 }
  0x11   : > { %p429_p10 = pneg %p676_p8  ;;  %s67_s26 = ssub.s32 %s610_s15, %s687_s24 }
  0x12   : > { %p698_p12 = scmp.eq.s32.totalorder %s67_s26, 0  ;;  %s612_s29 = smov [#allocation2]  }
  0x13   : > { %p691_p11 = pnand %p429_p10, %p819_p1  ;;  %s495_s5 = scalar_lea.vmem %s143_s23, 16 }
  0x14   : > { %p496_p13 = scmp.ne.s32.totalorder %s143_s23, %s495_s5  ;;  %p503_p7 = scmp.lt.s32.totalorder %s143_s23, %s143_s23 }
  0x15   : > { %432 = dma.hbm_to_smem (!%p691_p11), %s815_s0, 16, %s612_s29, [#allocation5]  }
  0x16   : > { %p497_p0 = pneg %p691_p11  ;;  %p504_p10 = scmp.lt.s32.totalorder %s495_s5, %s495_s5 }
  0x18   : > { %p498_p3 = pnand %p497_p0, %p496_p13  ;;  %p505_p9 = por %p504_p10, %p503_p7 }
  0x1a   : > { %p499_p5 = pneg %p498_p3 }
  0x1c   : > { %p506_p1 = pnand %p505_p9, %p499_p5 }
  0x1e   : > { %509 = shalt.err (!%p506_p1)
}
  0x1f   : > { %s613_s6 = smov [#allocation7]   ;;  %p77_p13 = scmp.ne.s32.totalorder %s606_s14, %s602_s13 }
  0x20   : > { %435 = dma.vmem_to_smem (!%p691_p11), %s143_s23, 16, %s613_s6, [#allocation6]  }
  0x21   : > { %s714_s7 = scalar_select %p698_p12, %s606_s14, %s70_s27  }
  0x22   : > { %p78_p0 = scmp.eq.s32.totalorder %s610_s15, 0  ;;  %p446_p9 = scmp.lt.s32.totalorder %s610_s15, 2 }
  0x23   : > { %s153_s8 = sand.u32 1, %s606_s14   ;;  %p723_p3 = por %p107_p2, %p77_p13 }
  0x24   : > { %p79_p1 = por %p78_p0, %p77_p13  ;;  %s396_s10 = sshll.u32 %s153_s8, 2 }
  0x25   : > { %s828_s9 = scalar_select %p723_p3, 1, 0 }
  0x26   : > { %s397_s11 = sshll.u32 %s610_s15, 6  ;;  %s157_s23 = scalar_lea.vmem [#allocation8], %s396_s10 }
  0x27   : > { %s731_s22 = scalar_lea.hbm %s817_s2, %s397_s11  ;;  %s164_s25 = sshll.u32 %s157_s23, 4  ;;  %s165_s25 = int_to_ptr.vmem [resolvable:$true] %s164_s25 }
  0x28   : > { %p733_p11 = pnand %p446_p9, %p79_p1  ;;  %s154_s27 = scalar_lea.sflag [#allocation3], %s153_s8 }
  0x29   : > { %s510_s28 = scalar_lea.hbm %s731_s22, 64  ;;  %s515_s4 = scalar_lea.hbm %s817_s2, 128 }
  0x2a   : > { %p511_p2 = scmp.ne.s32.totalorder %s731_s22, %s510_s28  ;;  %p512_p12 = pneg %p733_p11 }
  0x2b   : > { %p516_p10 = scmp.lt.s32.totalorder %s731_s22, %s817_s2  ;;  %p517_p13 = scmp.lt.s32.totalorder %s515_s4, %s510_s28 }
  0x2c   : > { %p513_p5 = pnand %p512_p12, %p511_p2 }
  0x2d   : > { %p518_p0 = por %p517_p13, %p516_p10 }
  0x2e   : > { %p514_p7 = pneg %p513_p5 }
  0x30   : > { %p519_p9 = pnand %p518_p0, %p514_p7 }
  0x32   : > { %522 = shalt.err (!%p519_p9)
}
  0x33   : > { %s523_s10 = scalar_lea.vmem %s165_s25, 64  ;;  %s614_s8 = smov [#allocation8]  }
  0x34   : > { %p524_p1 = scmp.ne.s32.totalorder %s165_s25, %s523_s10  ;;  %s528_s11 = sshll.u32 %s614_s8, 4  ;;  %s529_s11 = int_to_ptr.vmem [resolvable:$false] %s528_s11 }
  0x35   : > { %s530_s17 = scalar_lea.vmem %s529_s11, 128  ;;  %p531_p2 = scmp.lt.s32.totalorder %s165_s25, %s529_s11 }
  0x36   : > { %p526_p6 = pnand %p524_p1, %p512_p12  ;;  %p532_p5 = scmp.lt.s32.totalorder %s530_s17, %s523_s10 }
  0x38   : > { %p527_p3 = pneg %p526_p6  ;;  %p533_p4 = por %p532_p5, %p531_p2 }
  0x3a   : > { %p534_p8 = pnand %p533_p4, %p527_p3 }
  0x3c   : > { %537 = shalt.err (!%p534_p8)
}
  0x3d   : > { %439 = dma.hbm_to_vmem [thread:$0]  (!%p733_p11), %s731_s22, 64, %s165_s25, %s154_s27  }
  0x3e   : > { %p830_p7 = scmp.ne.s32.totalorder %s825_s20, 0 }
  0x3f   : > { %p831_p10 = scmp.eq.s32.totalorder (!%p830_p7), %s657_s16, 0 }
  0x40   : > { %173 = sbr.rel (%p830_p7) target bundleno = 121 (0x79), region = 32 }
  0x45   : > { %581 = dma.done.wait (%p831_p10), [#allocation5], 16   ;;  %p832_p6 = pmov %p831_p10 }
  0x47   : > { %583 = vsyncadd (%p832_p6), [#allocation5], 4294967280  ;;  %p833_p12 = pmov %p832_p6 }
  0x48   : > { %p834_p13 = pmov %p832_p6 }
  0x49   : > { %585 = dma.done.wait (%p833_p12), [#allocation6], 16  }
  0x4a   : > { %587 = vsyncadd (%p834_p13), [#allocation6], 4294967280  ;;  %s762_s21 = sand.u32 1, %s602_s13   ;;  %p835_p4 = scmp.ne.s32.totalorder %s823_s18, 0 }
  0x4b   : > { %s401_s20 = sshll.u32 %s762_s21, 2  ;;  %s184_s22 = scalar_lea.sflag [#allocation3], %s762_s21 }
  0x4c   : > { %s187_s23 = scalar_lea.vmem [#allocation8], %s401_s20 }
  0x4d   : > { %589 = dma.done.wait (%p835_p4), %s184_s22, 64  }
  0x4e   : > { %591 = vsyncadd (%p835_p4), %s184_s22, 4294967232 }
  0x4f   : > { %192 = sfence }
  0x50   : > { %s212_s25 = sld [smem:[#allocation7]]  ;;  %v211_v0 = vld [vmem:[%s187_s23] sm:$0x7]  ;;  %vm278_vm0 = vcmask 1040384   ;;  %s210_s11 = scalar_lea.vmem [#allocation9], %s401_s20  ;;  %vm280_vm1 = vcmask 1041408  }
  0x51   : > { %s213_s26 = sld [smem:[#allocation2]]  ;;  %s297_s17 = sshll.u32 %s210_s11, 4  ;;  %s775_s17 = int_to_ptr.vmem [resolvable:$true] %s297_s17 }
  0x52   : > { %s403_s27 = sld [smem:[#allocation2 + $0x3]]  ;;  %s414_s22 = sshll.u32 %s657_s16, 6 }
  0x53   : > { %s404_s28 = sld [smem:[#allocation2 + $0x6]]  ;;  %p836_p3 = scmp.ne.s32.totalorder %s828_s9, 0 }
  0x54   : > { %s405_s29 = sld [smem:[#allocation7 + $0x1]]  ;;  %s615_s16 = smov [#allocation9]  }
  0x55   : > { %s406_s30 = sld [smem:[#allocation2 + $0x1]]  ;;  %s542_s20 = sshll.u32 %s615_s16, 4  ;;  %s543_s20 = int_to_ptr.vmem [resolvable:$false] %s542_s20 }
  0x56   : > { %s407_s4 = sld [smem:[#allocation2 + $0x4]]  ;;  %v216_v4 = vstv %s212_s25  ;;  %p545_p9 = scmp.lt.s32.totalorder %s775_s17, %s543_s20 }
  0x57   : > { %v214_v1 = vstv %s213_s26  ;;  %s408_s5 = sld [smem:[#allocation2 + $0x7]]  ;;  %s295_s26 = scalar_lea.hbm %s818_s3, %s414_s22 }
  0x58   : > { %v215_v2 = vmul.f32 %v214_v1, %v211_v0  ;;  %v219_v3 = vstv %s403_s27  ;;  %s409_s6 = sld [smem:[#allocation7 + $0x2]]  ;;  %s284_s27 = scalar_lea.sflag [#allocation4], %s762_s21 }
  0x59   : > { %v220_v5 = vmul.f32 %v219_v3, %v211_v0  ;;  %v226_v6 = vstv %s404_s28  ;;  %s410_s10 = sld [smem:[#allocation2 + $0x2]]  ;;  %s538_s28 = scalar_lea.vmem %s775_s17, 64 }
  0x5a   : > { %s411_s18 = sld [smem:[#allocation2 + $0x5]]  ;;  %v227_v7 = vmul.f32 %v226_v6, %v211_v0  ;;  %v236_v9 = vstv %s405_s29  ;;  %v217_v10 = vadd.f32 %v216_v4, %v215_v2  ;;  %p539_p8 = scmp.ne.s32.totalorder %s775_s17, %s538_s28 }
  0x5b   : > { %v234_v8 = vstv %s406_s30  ;;  %s412_s8 = sld [smem:[#allocation2 + $0x8]]  ;;  %v222_v11 = vrot.slane %v220_v5, 1  ;;  %s544_s29 = scalar_lea.vmem %s543_s20, 128 }
  0x5c   : > { %v235_v12 = vmul.f32 %v234_v8, %v211_v0  ;;  %v239_v13 = vstv %s407_s4  ;;  %v229_v18 = vrot.slane %v227_v7, 2  ;;  %p540_p11 = pnand %p539_p8, %p836_p3  ;;  %p546_p1 = scmp.lt.s32.totalorder %s544_s29, %s538_s28 }
  0x5d   : > { %v240_v14 = vmul.f32 %v239_v13, %v211_v0  ;;  %v246_v15 = vstv %s408_s5  ;;  %v224_v22 = vadd.f32 %v222_v11, %v217_v10 }
  0x5e   : > { %v237_v16 = vadd.f32 %v236_v9, %v235_v12  ;;  %v247_v17 = vmul.f32 %v246_v15, %v211_v0  ;;  %v256_v21 = vstv %s409_s6  ;;  %p541_p0 = pneg %p540_p11  ;;  %p547_p2 = por %p546_p1, %p545_p9 }
  0x5f   : > { %v242_v19 = vrot.slane %v240_v14, 1  ;;  %v254_v20 = vstv %s410_s10  ;;  %v231_v33 = vadd.f32 %v229_v18, %v224_v22 }
  0x60   : > { %v249_v23 = vrot.slane %v247_v17, 2  ;;  %v255_v24 = vmul.f32 %v254_v20, %v211_v0  ;;  %v259_v25 = vstv %s411_s18  ;;  %p548_p5 = pnand %p547_p2, %p541_p0 }
  0x61   : > { %v244_v26 = vadd.f32 %v242_v19, %v237_v16  ;;  %v260_v27 = vmul.f32 %v259_v25, %v211_v0  ;;  %v266_v28 = vstv %s412_s8 }
  0x62   : > { %v257_v29 = vadd.f32 %v256_v21, %v255_v24  ;;  %v267_v30 = vmul.f32 %v266_v28, %v211_v0 }
  0x63   : > { %v251_v31 = vadd.f32 %v249_v23, %v244_v26  ;;  %v262_v32 = vrot.slane %v260_v27, 1 }
  0x64   : > { %v269_v34 = vrot.slane %v267_v30, 2 }
  0x65   : > { %v264_v35 = vadd.f32 %v262_v32, %v257_v29  ;;  %v273_v36 = vrot.slane %v251_v31, 7 }
  0x67   : > { %v271_v37 = vadd.f32 %v269_v34, %v264_v35  ;;  %v279_v38 = vsel %vm278_vm0, %v231_v33, %v273_v36 }
  0x69   : > { %v276_v39 = vrot.slane %v271_v37, 6 }
  0x6b   : > { %v281_v40 = vsel %vm280_vm1, %v279_v38, %v276_v39 }
  0x6c   : > { %282 = vst [vmem:[%s210_s11] sm:$0x7] %v281_v40 }
  0x6d   : > { %551 = shalt.err (!%p548_p5)
}
  0x6e   : > { %s552_s30 = scalar_lea.hbm %s295_s26, 64  ;;  %s556_s5 = scalar_lea.hbm %s818_s3, 128 }
  0x6f   : > { %p553_p7 = scmp.ne.s32.totalorder %s295_s26, %s552_s30  ;;  %p557_p12 = scmp.lt.s32.totalorder %s295_s26, %s818_s3 }
  0x70   : > { %p558_p13 = scmp.lt.s32.totalorder %s556_s5, %s552_s30 }
  0x71   : > { %p554_p10 = pnand %p553_p7, %p836_p3 }
  0x72   : > { %p559_p4 = por %p558_p13, %p557_p12 }
  0x73   : > { %p555_p6 = pneg %p554_p10 }
  0x75   : > { %p560_p8 = pnand %p559_p4, %p555_p6 }
  0x77   : > { %563 = shalt.err (!%p560_p8)
}
  0x78   : > { %427 = dma.vmem_to_hbm [thread:$0]  (%p836_p3), %s775_s17, 64, %s295_s26, %s284_s27  }
  0x79 PF: > { %s309_s18 = sand.u32 1, %s598_s12   ;;  %p837_p11 = scmp.ne.s32.totalorder %s824_s19, 0 }
  0x7a   : > { %p838_p0 = scmp.ge.s32.totalorder %s610_s15, 2  ;;  %s310_s8 = scalar_lea.sflag [#allocation4], %s309_s18 }
  0x7c   : > { %p441_p9 = pnand %p838_p0, %p837_p11 }
  0x7e   : > { %p442_p1 = pneg %p441_p9 }
  0x80   : > { %593 = dma.done.wait (%p442_p1), %s310_s8, 64  }
  0x81   : > { %595 = vsyncadd (%p442_p1), %s310_s8, 4294967232  ;;  %p18_p2 = scmp.ge.s32.totalorder %s687_s24, 4   ;;  %s839_s12 = smov %s602_s13 }
  0x82   : > { %s840_s13 = smov %s606_s14  ;;  %s841_s14 = smov %s714_s7 }
  0x83   : > { %s842_s15 = smov %s687_s24  ;;  %20 = sbr.rel (!%p18_p2) target bundleno = 7 (0x7), region = 87 }
  0x88   :  { %315 = vsyncpa [#allocation3], 1 }
  0x89   :  { %317 = vsyncpa [#allocation3 + $0x1], 1 }
  0x8a   :  { %318 = vsyncpa [#allocation4], 1 }
  0x8b   :  { %320 = vsyncpa [#allocation4 + $0x1], 1 }
  0x8c   :  { %321 = vsyncpa [#allocation5], 1 }
  0x8d   :  { %323 = vsyncpa [#allocation5 + $0x1], 1 }
  0x8e   :  { %324 = vsyncpa [#allocation6], 1 }
  0x8f   :  { %326 = vsyncpa [#allocation6 + $0x1], 1 }

</bundles_post_ra>
